<compile_context>
chip_gen: v5e
topology: v5e:2x2
jax: 0.10.0
libtpu: 0.0.40
codegen_flags: <defaults>
</compile_context>

<pallas_src>
import jax
import jax.numpy as jnp
from jax import lax
from jax.experimental import pallas as pl
from jax.experimental.pallas import tpu as pltpu

HIDDEN = 32
INPUT = 7
OUT = 2
GATES = 4 * HIDDEN            # 128: one layer's gates (i, f, g, o)
GATES2 = 2 * GATES            # 256: both layers' gates, interleaved per gate
OUT_PAD = 128                 # lane-dense head output width


def _round_up(x, m):
    return ((x + m - 1) // m) * m


def _lstm_head_kernel(gxb_ref, wf_ref, wlin_ref, blin_ref, out_ref):
    """One batch tile.

    gxb_ref:  (T+1, B, 256)  per-step gate addend, interleaved [i0 i1 f0 f1 g0 g1 o0 o1]:
                             layer-0 columns hold gx(s) = x(s)@Wih0 + b0 (pre-scaled),
                             layer-1 columns hold b1 (zeroed at s=0), all pre-scaled.
    wf_ref:   (64, 256)      fused block weight [[Whh0, Wih1], [0, Whh1]], gate-interleaved cols.
    wlin_ref: (32, 128)      linear head weight, zero-padded beyond column OUT.
    blin_ref: (1, 128)       linear head bias, zero-padded.
    out_ref:  (B, 128)       lane-dense output; wrapper slices [:, :OUT].
    """
    Tp1, B, _ = gxb_ref.shape
    H = HIDDEN
    wf = wf_ref[...]                       # resident across the whole recurrence

    def step(s, carry):
        h_packed, c_packed = carry         # (B, 2H) each: [h0 | h1], [c0 | c1]
        # Single fused MXU op per timestep: (B, 64) @ (64, 256).
        m = jnp.dot(h_packed, wf, preferred_element_type=jnp.float32)
        gates = m + gxb_ref[s]             # (B, 256)
        # One full-width tanh (EUP); sigmoid recovered on the VPU.
        th = jnp.tanh(gates)
        sg = 0.5 * th + 0.5                # == sigmoid(original x) on pre-scaled lanes
        i_b = sg[:, 0 * H:2 * H]           # (B, 64) = [i0 | i1]
        f_b = sg[:, 2 * H:4 * H]           # [f0 | f1]
        g_b = th[:, 4 * H:6 * H]           # [g0 | g1]   (unscaled -> plain tanh)
        o_b = sg[:, 6 * H:8 * H]           # [o0 | o1]
        c_new = f_b * c_packed + i_b * g_b
        h_new = o_b * jnp.tanh(c_new)      # packed [h0(s) | h1(s-1)] -> next matmul LHS
        return (h_new, c_new)

    zeros = jnp.zeros((B, 2 * H), jnp.float32)
    # Full unroll for small static T gives the scheduler cross-iteration
    # visibility; cap unrolling for long sequences to avoid spills/code blowup.
    unroll = True if Tp1 <= 17 else 8
    h_packed, _ = lax.fori_loop(0, Tp1, step, (zeros, zeros), unroll=unroll)

    # Dropout is the identity in eval mode (nn.Dropout only drops in training).
    # TODO(synk): training-mode dropout (p=0.5) would use pltpu.prng_seed /
    #             pltpu.prng_random_bits to build a Bernoulli mask.
    h1 = h_packed[:, H:2 * H]              # h1(T-1), the last real timestep
    out_ref[...] = (jnp.dot(h1, wlin_ref[...], preferred_element_type=jnp.float32)
                    + blin_ref[...])


def init_params(key):
    """Deterministic parameters, PyTorch-default uniform(-1/sqrt(H), 1/sqrt(H))."""
    ks = jax.random.split(key, 12)
    bound = 1.0 / jnp.sqrt(jnp.float32(HIDDEN))

    def u(k, shape):
        return jax.random.uniform(k, shape, jnp.float32, minval=-bound, maxval=bound)

    return {
        # layer 0
        "w_ih0": u(ks[0], (GATES, INPUT)),
        "w_hh0": u(ks[1], (GATES, HIDDEN)),
        "b_ih0": u(ks[2], (GATES,)),
        "b_hh0": u(ks[3], (GATES,)),
        # layer 1
        "w_ih1": u(ks[4], (GATES, HIDDEN)),
        "w_hh1": u(ks[5], (GATES, HIDDEN)),
        "b_ih1": u(ks[6], (GATES,)),
        "b_hh1": u(ks[7], (GATES,)),
        # linear head
        "w_lin": u(ks[8], (OUT, HIDDEN)),
        "b_lin": u(ks[9], (OUT,)),
    }


def stock_forecast_only_lstm(x, params):
    """x: (B, T, 7) float32 (PyTorch batch_first). Returns (B, 2) float32."""
    B, T, I = x.shape
    assert I == INPUT
    H = HIDDEN
    x32 = x.astype(jnp.float32)

    # ---- batch tiling: >= 2 tiles whenever B > 8 so v7x's 2nd TC gets work ----
    if B <= 8:
        bt = 8
    else:
        bt = min(64, _round_up((B + 1) // 2, 8))
    B_pad = _round_up(B, bt)
    n_tiles = B_pad // bt

    # ---- gate pre-scaling for the tanh-only trick: sigmoid(x)=0.5*tanh(x/2)+0.5 ----
    # PyTorch gate order i, f, g, o: scale i/f/o columns by 0.5, leave g alone.
    s_gate = jnp.concatenate([jnp.full((H,), 0.5), jnp.full((H,), 0.5),
                              jnp.ones((H,)), jnp.full((H,), 0.5)]).astype(jnp.float32)

    wih0_s = params["w_ih0"].T * s_gate                                  # (I, 4H)
    b0_s = (params["b_ih0"] + params["b_hh0"]) * s_gate                  # (4H,)
    whh0_s = params["w_hh0"].T * s_gate                                  # (H, 4H)
    wih1_s = params["w_ih1"].T * s_gate                                  # (H, 4H)
    whh1_s = params["w_hh1"].T * s_gate                                  # (H, 4H)
    b1_s = (params["b_ih1"] + params["b_hh1"]) * s_gate                  # (4H,)

    # ---- fused block weight, gate-interleaved columns [i0 i1 f0 f1 g0 g1 o0 o1] ----
    zerosH = jnp.zeros((H, H), jnp.float32)
    cols = []
    for gi in range(4):
        c = slice(gi * H, (gi + 1) * H)
        cols.append(jnp.concatenate([whh0_s[:, c], zerosH], axis=0))         # layer-0 gate
        cols.append(jnp.concatenate([wih1_s[:, c], whh1_s[:, c]], axis=0))   # layer-1 gate
    w_fused = jnp.concatenate(cols, axis=1)                              # (2H, 8H) = (64, 256)

    # ---- hoisted layer-0 input projection, output already time-major ----
    gx = jnp.einsum("bti,ig->tbg", x32, wih0_s) + b0_s                   # (T, B, 4H)
    if B_pad != B:
        gx = jnp.pad(gx, ((0, 0), (0, B_pad - B), (0, 0)))

    # ---- per-step addend gxb (T+1, B_pad, 256):
    #   layer-0 columns: gx(s)  (gx(T) := 0, its h0(T) is discarded)
    #   layer-1 columns: b1     (zeroed at s=0 so h1(-1)/c1(-1) stay exactly 0)
    gx_ext = jnp.concatenate([gx, jnp.zeros((1, B_pad, GATES), jnp.float32)], axis=0)
    step_mask = (jnp.arange(T + 1) > 0).astype(jnp.float32).reshape(T + 1, 1, 1, 1, 1)
    b1_blk = jnp.broadcast_to(b1_s.reshape(1, 1, 4, 1, H),
                              (T + 1, B_pad, 4, 1, H)) * step_mask
    gxb = jnp.concatenate([gx_ext.reshape(T + 1, B_pad, 4, 1, H), b1_blk], axis=3)
    gxb = gxb.reshape(T + 1, B_pad, GATES2)                              # (T+1, B_pad, 256)

    # ---- lane-dense linear head (pad N from 2 to 128; sliced after the call) ----
    wlin_pad = jnp.zeros((H, OUT_PAD), jnp.float32).at[:, :OUT].set(params["w_lin"].T)
    blin_pad = jnp.zeros((1, OUT_PAD), jnp.float32).at[:, :OUT].set(params["b_lin"])

    # ---- VMEM budgeting: gxb block is double-buffered and scales with T ----
    # TODO(synk): for very long T (hundreds+) on v7x (64 MiB VMEM), add a T grid
    #             axis ("arbitrary") with h/c carries in scratch instead of one
    #             whole-T block; small/medium T fits comfortably as-is.
    gxb_block_bytes = (T + 1) * bt * GATES2 * 4
    vmem_needed = 2 * gxb_block_bytes + (4 << 20)
    vmem_limit = None
    if vmem_needed > (16 << 20):
        vmem_limit = int(min(100 << 20, vmem_needed + (16 << 20)))

    grid_spec = pltpu.PrefetchScalarGridSpec(
        num_scalar_prefetch=0,
        grid=(n_tiles,),
        in_specs=[
            pl.BlockSpec((T + 1, bt, GATES2), lambda b: (0, b, 0)),     # gxb tile
            pl.BlockSpec((2 * HIDDEN, GATES2), lambda b: (0, 0)),       # fused weight
            pl.BlockSpec((HIDDEN, OUT_PAD), lambda b: (0, 0)),          # head weight
            pl.BlockSpec((1, OUT_PAD), lambda b: (0, 0)),               # head bias
        ],
        out_specs=pl.BlockSpec((bt, OUT_PAD), lambda b: (b, 0)),
    )

    out = pl.pallas_call(
        _lstm_head_kernel,
        out_shape=jax.ShapeDtypeStruct((B_pad, OUT_PAD), jnp.float32),
        grid_spec=grid_spec,
        compiler_params=pltpu.CompilerParams(
            dimension_semantics=("parallel",),
            vmem_limit_bytes=vmem_limit),
    )(gxb, w_fused, wlin_pad, blin_pad)
    return out[:B, :OUT]


if __name__ == "__main__":
    key = jax.random.PRNGKey(0)
    k_x, k_p = jax.random.split(key)

    B, T = 2, 8
    x = jax.random.normal(k_x, (B, T, INPUT), dtype=jnp.float32)
    params = init_params(k_p)

    pred = stock_forecast_only_lstm(x, params)
    jax.block_until_ready(pred)
    assert pred.shape == (B, OUT) and pred.dtype == jnp.float32
    assert bool(jnp.all(jnp.isfinite(pred)))
    print("KERNEL_OK")
</pallas_src>

<mosaic_0001>
module attributes {stable_mosaic.version = 11 : i64} {
  func.func @_lstm_head_kernel(%arg0: i32, %arg1: memref<9x8x256xf32, #tpu.memory_space<vmem>>, %arg2: memref<64x256xf32, #tpu.memory_space<vmem>>, %arg3: memref<32x128xf32, #tpu.memory_space<vmem>>, %arg4: memref<1x128xf32, #tpu.memory_space<vmem>>, %arg5: memref<8x128xf32, #tpu.memory_space<vmem>>) attributes {dimension_semantics = [#tpu.dimension_semantics<parallel>], iteration_bounds = array<i64: 1>, scalar_prefetch = 0 : i64, scratch_operands = 0 : i64, tpu.core_type = #tpu.core_type<tc>, window_params = [{transform_indices = @transform_0, window_bounds = array<i64: 9, 8, 256>}, {pipeline_mode = #tpu.pipeline_mode<synchronous>, transform_indices = @transform_1, window_bounds = array<i64: 64, 256>}, {pipeline_mode = #tpu.pipeline_mode<synchronous>, transform_indices = @transform_2, window_bounds = array<i64: 32, 128>}, {pipeline_mode = #tpu.pipeline_mode<synchronous>, transform_indices = @transform_3, window_bounds = array<i64: 1, 128>}, {transform_indices = @transform_4, window_bounds = array<i64: 8, 128>}]} {
    %c0 = arith.constant 0 : index
    %c0_0 = arith.constant 0 : index
    %0 = vector.load %arg2[%c0, %c0_0] : memref<64x256xf32, #tpu.memory_space<vmem>>, vector<64x256xf32>
    %cst = arith.constant 0.000000e+00 : f32
    %1 = vector.broadcast %cst : f32 to vector<8x64xf32>
    %c0_i32 = arith.constant 0 : i32
    %cst_1 = arith.constant dense<0.000000e+00> : vector<8x256xf32>
    %2 = tpu.matmul %1, %0, %cst_1 {dimension_numbers = #tpu.dot_dimension_numbers<[1], [0], [0], [1], [0, 0, 1, 1], [], []>} : vector<8x64xf32>, vector<64x256xf32>, vector<8x256xf32> -> vector<8x256xf32>
    %3 = arith.index_cast %c0_i32 : i32 to index
    %c0_2 = arith.constant 0 : index
    %c0_3 = arith.constant 0 : index
    %4 = vector.load %arg1[%3, %c0_2, %c0_3] : memref<9x8x256xf32, #tpu.memory_space<vmem>>, vector<1x8x256xf32>
    %5 = vector.shape_cast %4 : vector<1x8x256xf32> to vector<8x256xf32>
    %6 = arith.addf %2, %5 : vector<8x256xf32>
    %7 = math.tanh %6 : vector<8x256xf32>
    %cst_4 = arith.constant 5.000000e-01 : f32
    %8 = vector.broadcast %cst_4 : f32 to vector<8x256xf32>
    %9 = arith.mulf %8, %7 : vector<8x256xf32>
    %cst_5 = arith.constant 5.000000e-01 : f32
    %10 = vector.broadcast %cst_5 : f32 to vector<8x256xf32>
    %11 = arith.addf %9, %10 : vector<8x256xf32>
    %12 = vector.extract_strided_slice %11 {offsets = [0, 0], sizes = [8, 64], strides = [1, 1]} : vector<8x256xf32> to vector<8x64xf32>
    %13 = vector.extract_strided_slice %11 {offsets = [0, 64], sizes = [8, 64], strides = [1, 1]} : vector<8x256xf32> to vector<8x64xf32>
    %14 = vector.extract_strided_slice %7 {offsets = [0, 128], sizes = [8, 64], strides = [1, 1]} : vector<8x256xf32> to vector<8x64xf32>
    %15 = vector.extract_strided_slice %11 {offsets = [0, 192], sizes = [8, 64], strides = [1, 1]} : vector<8x256xf32> to vector<8x64xf32>
    %16 = arith.mulf %13, %1 : vector<8x64xf32>
    %17 = arith.mulf %12, %14 : vector<8x64xf32>
    %18 = arith.addf %16, %17 : vector<8x64xf32>
    %19 = math.tanh %18 : vector<8x64xf32>
    %20 = arith.mulf %15, %19 : vector<8x64xf32>
    %c1_i32 = arith.constant 1 : i32
    %cst_6 = arith.constant dense<0.000000e+00> : vector<8x256xf32>
    %21 = tpu.matmul %20, %0, %cst_6 {dimension_numbers = #tpu.dot_dimension_numbers<[1], [0], [0], [1], [0, 0, 1, 1], [], []>} : vector<8x64xf32>, vector<64x256xf32>, vector<8x256xf32> -> vector<8x256xf32>
    %22 = arith.index_cast %c1_i32 : i32 to index
    %c0_7 = arith.constant 0 : index
    %c0_8 = arith.constant 0 : index
    %23 = vector.load %arg1[%22, %c0_7, %c0_8] : memref<9x8x256xf32, #tpu.memory_space<vmem>>, vector<1x8x256xf32>
    %24 = vector.shape_cast %23 : vector<1x8x256xf32> to vector<8x256xf32>
    %25 = arith.addf %21, %24 : vector<8x256xf32>
    %26 = math.tanh %25 : vector<8x256xf32>
    %cst_9 = arith.constant 5.000000e-01 : f32
    %27 = vector.broadcast %cst_9 : f32 to vector<8x256xf32>
    %28 = arith.mulf %27, %26 : vector<8x256xf32>
    %cst_10 = arith.constant 5.000000e-01 : f32
    %29 = vector.broadcast %cst_10 : f32 to vector<8x256xf32>
    %30 = arith.addf %28, %29 : vector<8x256xf32>
    %31 = vector.extract_strided_slice %30 {offsets = [0, 0], sizes = [8, 64], strides = [1, 1]} : vector<8x256xf32> to vector<8x64xf32>
    %32 = vector.extract_strided_slice %30 {offsets = [0, 64], sizes = [8, 64], strides = [1, 1]} : vector<8x256xf32> to vector<8x64xf32>
    %33 = vector.extract_strided_slice %26 {offsets = [0, 128], sizes = [8, 64], strides = [1, 1]} : vector<8x256xf32> to vector<8x64xf32>
    %34 = vector.extract_strided_slice %30 {offsets = [0, 192], sizes = [8, 64], strides = [1, 1]} : vector<8x256xf32> to vector<8x64xf32>
    %35 = arith.mulf %32, %18 : vector<8x64xf32>
    %36 = arith.mulf %31, %33 : vector<8x64xf32>
    %37 = arith.addf %35, %36 : vector<8x64xf32>
    %38 = math.tanh %37 : vector<8x64xf32>
    %39 = arith.mulf %34, %38 : vector<8x64xf32>
    %c2_i32 = arith.constant 2 : i32
    %cst_11 = arith.constant dense<0.000000e+00> : vector<8x256xf32>
    %40 = tpu.matmul %39, %0, %cst_11 {dimension_numbers = #tpu.dot_dimension_numbers<[1], [0], [0], [1], [0, 0, 1, 1], [], []>} : vector<8x64xf32>, vector<64x256xf32>, vector<8x256xf32> -> vector<8x256xf32>
    %41 = arith.index_cast %c2_i32 : i32 to index
    %c0_12 = arith.constant 0 : index
    %c0_13 = arith.constant 0 : index
    %42 = vector.load %arg1[%41, %c0_12, %c0_13] : memref<9x8x256xf32, #tpu.memory_space<vmem>>, vector<1x8x256xf32>
    %43 = vector.shape_cast %42 : vector<1x8x256xf32> to vector<8x256xf32>
    %44 = arith.addf %40, %43 : vector<8x256xf32>
    %45 = math.tanh %44 : vector<8x256xf32>
    %cst_14 = arith.constant 5.000000e-01 : f32
    %46 = vector.broadcast %cst_14 : f32 to vector<8x256xf32>
    %47 = arith.mulf %46, %45 : vector<8x256xf32>
    %cst_15 = arith.constant 5.000000e-01 : f32
    %48 = vector.broadcast %cst_15 : f32 to vector<8x256xf32>
    %49 = arith.addf %47, %48 : vector<8x256xf32>
    %50 = vector.extract_strided_slice %49 {offsets = [0, 0], sizes = [8, 64], strides = [1, 1]} : vector<8x256xf32> to vector<8x64xf32>
    %51 = vector.extract_strided_slice %49 {offsets = [0, 64], sizes = [8, 64], strides = [1, 1]} : vector<8x256xf32> to vector<8x64xf32>
    %52 = vector.extract_strided_slice %45 {offsets = [0, 128], sizes = [8, 64], strides = [1, 1]} : vector<8x256xf32> to vector<8x64xf32>
    %53 = vector.extract_strided_slice %49 {offsets = [0, 192], sizes = [8, 64], strides = [1, 1]} : vector<8x256xf32> to vector<8x64xf32>
    %54 = arith.mulf %51, %37 : vector<8x64xf32>
    %55 = arith.mulf %50, %52 : vector<8x64xf32>
    %56 = arith.addf %54, %55 : vector<8x64xf32>
    %57 = math.tanh %56 : vector<8x64xf32>
    %58 = arith.mulf %53, %57 : vector<8x64xf32>
    %c3_i32 = arith.constant 3 : i32
    %cst_16 = arith.constant dense<0.000000e+00> : vector<8x256xf32>
    %59 = tpu.matmul %58, %0, %cst_16 {dimension_numbers = #tpu.dot_dimension_numbers<[1], [0], [0], [1], [0, 0, 1, 1], [], []>} : vector<8x64xf32>, vector<64x256xf32>, vector<8x256xf32> -> vector<8x256xf32>
    %60 = arith.index_cast %c3_i32 : i32 to index
    %c0_17 = arith.constant 0 : index
    %c0_18 = arith.constant 0 : index
    %61 = vector.load %arg1[%60, %c0_17, %c0_18] : memref<9x8x256xf32, #tpu.memory_space<vmem>>, vector<1x8x256xf32>
    %62 = vector.shape_cast %61 : vector<1x8x256xf32> to vector<8x256xf32>
    %63 = arith.addf %59, %62 : vector<8x256xf32>
    %64 = math.tanh %63 : vector<8x256xf32>
    %cst_19 = arith.constant 5.000000e-01 : f32
    %65 = vector.broadcast %cst_19 : f32 to vector<8x256xf32>
    %66 = arith.mulf %65, %64 : vector<8x256xf32>
    %cst_20 = arith.constant 5.000000e-01 : f32
    %67 = vector.broadcast %cst_20 : f32 to vector<8x256xf32>
    %68 = arith.addf %66, %67 : vector<8x256xf32>
    %69 = vector.extract_strided_slice %68 {offsets = [0, 0], sizes = [8, 64], strides = [1, 1]} : vector<8x256xf32> to vector<8x64xf32>
    %70 = vector.extract_strided_slice %68 {offsets = [0, 64], sizes = [8, 64], strides = [1, 1]} : vector<8x256xf32> to vector<8x64xf32>
    %71 = vector.extract_strided_slice %64 {offsets = [0, 128], sizes = [8, 64], strides = [1, 1]} : vector<8x256xf32> to vector<8x64xf32>
    %72 = vector.extract_strided_slice %68 {offsets = [0, 192], sizes = [8, 64], strides = [1, 1]} : vector<8x256xf32> to vector<8x64xf32>
    %73 = arith.mulf %70, %56 : vector<8x64xf32>
    %74 = arith.mulf %69, %71 : vector<8x64xf32>
    %75 = arith.addf %73, %74 : vector<8x64xf32>
    %76 = math.tanh %75 : vector<8x64xf32>
    %77 = arith.mulf %72, %76 : vector<8x64xf32>
    %c4_i32 = arith.constant 4 : i32
    %cst_21 = arith.constant dense<0.000000e+00> : vector<8x256xf32>
    %78 = tpu.matmul %77, %0, %cst_21 {dimension_numbers = #tpu.dot_dimension_numbers<[1], [0], [0], [1], [0, 0, 1, 1], [], []>} : vector<8x64xf32>, vector<64x256xf32>, vector<8x256xf32> -> vector<8x256xf32>
    %79 = arith.index_cast %c4_i32 : i32 to index
    %c0_22 = arith.constant 0 : index
    %c0_23 = arith.constant 0 : index
    %80 = vector.load %arg1[%79, %c0_22, %c0_23] : memref<9x8x256xf32, #tpu.memory_space<vmem>>, vector<1x8x256xf32>
    %81 = vector.shape_cast %80 : vector<1x8x256xf32> to vector<8x256xf32>
    %82 = arith.addf %78, %81 : vector<8x256xf32>
    %83 = math.tanh %82 : vector<8x256xf32>
    %cst_24 = arith.constant 5.000000e-01 : f32
    %84 = vector.broadcast %cst_24 : f32 to vector<8x256xf32>
    %85 = arith.mulf %84, %83 : vector<8x256xf32>
    %cst_25 = arith.constant 5.000000e-01 : f32
    %86 = vector.broadcast %cst_25 : f32 to vector<8x256xf32>
    %87 = arith.addf %85, %86 : vector<8x256xf32>
    %88 = vector.extract_strided_slice %87 {offsets = [0, 0], sizes = [8, 64], strides = [1, 1]} : vector<8x256xf32> to vector<8x64xf32>
    %89 = vector.extract_strided_slice %87 {offsets = [0, 64], sizes = [8, 64], strides = [1, 1]} : vector<8x256xf32> to vector<8x64xf32>
    %90 = vector.extract_strided_slice %83 {offsets = [0, 128], sizes = [8, 64], strides = [1, 1]} : vector<8x256xf32> to vector<8x64xf32>
    %91 = vector.extract_strided_slice %87 {offsets = [0, 192], sizes = [8, 64], strides = [1, 1]} : vector<8x256xf32> to vector<8x64xf32>
    %92 = arith.mulf %89, %75 : vector<8x64xf32>
    %93 = arith.mulf %88, %90 : vector<8x64xf32>
    %94 = arith.addf %92, %93 : vector<8x64xf32>
    %95 = math.tanh %94 : vector<8x64xf32>
    %96 = arith.mulf %91, %95 : vector<8x64xf32>
    %c5_i32 = arith.constant 5 : i32
    %cst_26 = arith.constant dense<0.000000e+00> : vector<8x256xf32>
    %97 = tpu.matmul %96, %0, %cst_26 {dimension_numbers = #tpu.dot_dimension_numbers<[1], [0], [0], [1], [0, 0, 1, 1], [], []>} : vector<8x64xf32>, vector<64x256xf32>, vector<8x256xf32> -> vector<8x256xf32>
    %98 = arith.index_cast %c5_i32 : i32 to index
    %c0_27 = arith.constant 0 : index
    %c0_28 = arith.constant 0 : index
    %99 = vector.load %arg1[%98, %c0_27, %c0_28] : memref<9x8x256xf32, #tpu.memory_space<vmem>>, vector<1x8x256xf32>
    %100 = vector.shape_cast %99 : vector<1x8x256xf32> to vector<8x256xf32>
    %101 = arith.addf %97, %100 : vector<8x256xf32>
    %102 = math.tanh %101 : vector<8x256xf32>
    %cst_29 = arith.constant 5.000000e-01 : f32
    %103 = vector.broadcast %cst_29 : f32 to vector<8x256xf32>
    %104 = arith.mulf %103, %102 : vector<8x256xf32>
    %cst_30 = arith.constant 5.000000e-01 : f32
    %105 = vector.broadcast %cst_30 : f32 to vector<8x256xf32>
    %106 = arith.addf %104, %105 : vector<8x256xf32>
    %107 = vector.extract_strided_slice %106 {offsets = [0, 0], sizes = [8, 64], strides = [1, 1]} : vector<8x256xf32> to vector<8x64xf32>
    %108 = vector.extract_strided_slice %106 {offsets = [0, 64], sizes = [8, 64], strides = [1, 1]} : vector<8x256xf32> to vector<8x64xf32>
    %109 = vector.extract_strided_slice %102 {offsets = [0, 128], sizes = [8, 64], strides = [1, 1]} : vector<8x256xf32> to vector<8x64xf32>
    %110 = vector.extract_strided_slice %106 {offsets = [0, 192], sizes = [8, 64], strides = [1, 1]} : vector<8x256xf32> to vector<8x64xf32>
    %111 = arith.mulf %108, %94 : vector<8x64xf32>
    %112 = arith.mulf %107, %109 : vector<8x64xf32>
    %113 = arith.addf %111, %112 : vector<8x64xf32>
    %114 = math.tanh %113 : vector<8x64xf32>
    %115 = arith.mulf %110, %114 : vector<8x64xf32>
    %c6_i32 = arith.constant 6 : i32
    %cst_31 = arith.constant dense<0.000000e+00> : vector<8x256xf32>
    %116 = tpu.matmul %115, %0, %cst_31 {dimension_numbers = #tpu.dot_dimension_numbers<[1], [0], [0], [1], [0, 0, 1, 1], [], []>} : vector<8x64xf32>, vector<64x256xf32>, vector<8x256xf32> -> vector<8x256xf32>
    %117 = arith.index_cast %c6_i32 : i32 to index
    %c0_32 = arith.constant 0 : index
    %c0_33 = arith.constant 0 : index
    %118 = vector.load %arg1[%117, %c0_32, %c0_33] : memref<9x8x256xf32, #tpu.memory_space<vmem>>, vector<1x8x256xf32>
    %119 = vector.shape_cast %118 : vector<1x8x256xf32> to vector<8x256xf32>
    %120 = arith.addf %116, %119 : vector<8x256xf32>
    %121 = math.tanh %120 : vector<8x256xf32>
    %cst_34 = arith.constant 5.000000e-01 : f32
    %122 = vector.broadcast %cst_34 : f32 to vector<8x256xf32>
    %123 = arith.mulf %122, %121 : vector<8x256xf32>
    %cst_35 = arith.constant 5.000000e-01 : f32
    %124 = vector.broadcast %cst_35 : f32 to vector<8x256xf32>
    %125 = arith.addf %123, %124 : vector<8x256xf32>
    %126 = vector.extract_strided_slice %125 {offsets = [0, 0], sizes = [8, 64], strides = [1, 1]} : vector<8x256xf32> to vector<8x64xf32>
    %127 = vector.extract_strided_slice %125 {offsets = [0, 64], sizes = [8, 64], strides = [1, 1]} : vector<8x256xf32> to vector<8x64xf32>
    %128 = vector.extract_strided_slice %121 {offsets = [0, 128], sizes = [8, 64], strides = [1, 1]} : vector<8x256xf32> to vector<8x64xf32>
    %129 = vector.extract_strided_slice %125 {offsets = [0, 192], sizes = [8, 64], strides = [1, 1]} : vector<8x256xf32> to vector<8x64xf32>
    %130 = arith.mulf %127, %113 : vector<8x64xf32>
    %131 = arith.mulf %126, %128 : vector<8x64xf32>
    %132 = arith.addf %130, %131 : vector<8x64xf32>
    %133 = math.tanh %132 : vector<8x64xf32>
    %134 = arith.mulf %129, %133 : vector<8x64xf32>
    %c7_i32 = arith.constant 7 : i32
    %cst_36 = arith.constant dense<0.000000e+00> : vector<8x256xf32>
    %135 = tpu.matmul %134, %0, %cst_36 {dimension_numbers = #tpu.dot_dimension_numbers<[1], [0], [0], [1], [0, 0, 1, 1], [], []>} : vector<8x64xf32>, vector<64x256xf32>, vector<8x256xf32> -> vector<8x256xf32>
    %136 = arith.index_cast %c7_i32 : i32 to index
    %c0_37 = arith.constant 0 : index
    %c0_38 = arith.constant 0 : index
    %137 = vector.load %arg1[%136, %c0_37, %c0_38] : memref<9x8x256xf32, #tpu.memory_space<vmem>>, vector<1x8x256xf32>
    %138 = vector.shape_cast %137 : vector<1x8x256xf32> to vector<8x256xf32>
    %139 = arith.addf %135, %138 : vector<8x256xf32>
    %140 = math.tanh %139 : vector<8x256xf32>
    %cst_39 = arith.constant 5.000000e-01 : f32
    %141 = vector.broadcast %cst_39 : f32 to vector<8x256xf32>
    %142 = arith.mulf %141, %140 : vector<8x256xf32>
    %cst_40 = arith.constant 5.000000e-01 : f32
    %143 = vector.broadcast %cst_40 : f32 to vector<8x256xf32>
    %144 = arith.addf %142, %143 : vector<8x256xf32>
    %145 = vector.extract_strided_slice %144 {offsets = [0, 0], sizes = [8, 64], strides = [1, 1]} : vector<8x256xf32> to vector<8x64xf32>
    %146 = vector.extract_strided_slice %144 {offsets = [0, 64], sizes = [8, 64], strides = [1, 1]} : vector<8x256xf32> to vector<8x64xf32>
    %147 = vector.extract_strided_slice %140 {offsets = [0, 128], sizes = [8, 64], strides = [1, 1]} : vector<8x256xf32> to vector<8x64xf32>
    %148 = vector.extract_strided_slice %144 {offsets = [0, 192], sizes = [8, 64], strides = [1, 1]} : vector<8x256xf32> to vector<8x64xf32>
    %149 = arith.mulf %146, %132 : vector<8x64xf32>
    %150 = arith.mulf %145, %147 : vector<8x64xf32>
    %151 = arith.addf %149, %150 : vector<8x64xf32>
    %152 = math.tanh %151 : vector<8x64xf32>
    %153 = arith.mulf %148, %152 : vector<8x64xf32>
    %c8_i32 = arith.constant 8 : i32
    %cst_41 = arith.constant dense<0.000000e+00> : vector<8x256xf32>
    %154 = tpu.matmul %153, %0, %cst_41 {dimension_numbers = #tpu.dot_dimension_numbers<[1], [0], [0], [1], [0, 0, 1, 1], [], []>} : vector<8x64xf32>, vector<64x256xf32>, vector<8x256xf32> -> vector<8x256xf32>
    %155 = arith.index_cast %c8_i32 : i32 to index
    %c0_42 = arith.constant 0 : index
    %c0_43 = arith.constant 0 : index
    %156 = vector.load %arg1[%155, %c0_42, %c0_43] : memref<9x8x256xf32, #tpu.memory_space<vmem>>, vector<1x8x256xf32>
    %157 = vector.shape_cast %156 : vector<1x8x256xf32> to vector<8x256xf32>
    %158 = arith.addf %154, %157 : vector<8x256xf32>
    %159 = math.tanh %158 : vector<8x256xf32>
    %cst_44 = arith.constant 5.000000e-01 : f32
    %160 = vector.broadcast %cst_44 : f32 to vector<8x256xf32>
    %161 = arith.mulf %160, %159 : vector<8x256xf32>
    %cst_45 = arith.constant 5.000000e-01 : f32
    %162 = vector.broadcast %cst_45 : f32 to vector<8x256xf32>
    %163 = arith.addf %161, %162 : vector<8x256xf32>
    %164 = vector.extract_strided_slice %163 {offsets = [0, 0], sizes = [8, 64], strides = [1, 1]} : vector<8x256xf32> to vector<8x64xf32>
    %165 = vector.extract_strided_slice %163 {offsets = [0, 64], sizes = [8, 64], strides = [1, 1]} : vector<8x256xf32> to vector<8x64xf32>
    %166 = vector.extract_strided_slice %159 {offsets = [0, 128], sizes = [8, 64], strides = [1, 1]} : vector<8x256xf32> to vector<8x64xf32>
    %167 = vector.extract_strided_slice %163 {offsets = [0, 192], sizes = [8, 64], strides = [1, 1]} : vector<8x256xf32> to vector<8x64xf32>
    %168 = arith.mulf %165, %151 : vector<8x64xf32>
    %169 = arith.mulf %164, %166 : vector<8x64xf32>
    %170 = arith.addf %168, %169 : vector<8x64xf32>
    %171 = math.tanh %170 : vector<8x64xf32>
    %172 = arith.mulf %167, %171 : vector<8x64xf32>
    %c9_i32 = arith.constant 9 : i32
    %173 = vector.extract_strided_slice %172 {offsets = [0, 32], sizes = [8, 32], strides = [1, 1]} : vector<8x64xf32> to vector<8x32xf32>
    %c0_46 = arith.constant 0 : index
    %c0_47 = arith.constant 0 : index
    %174 = vector.load %arg3[%c0_46, %c0_47] : memref<32x128xf32, #tpu.memory_space<vmem>>, vector<32x128xf32>
    %cst_48 = arith.constant dense<0.000000e+00> : vector<8x128xf32>
    %175 = tpu.matmul %173, %174, %cst_48 {dimension_numbers = #tpu.dot_dimension_numbers<[1], [0], [0], [1], [0, 0, 1, 1], [], []>} : vector<8x32xf32>, vector<32x128xf32>, vector<8x128xf32> -> vector<8x128xf32>
    %c0_49 = arith.constant 0 : index
    %c0_50 = arith.constant 0 : index
    %176 = vector.load %arg4[%c0_49, %c0_50] : memref<1x128xf32, #tpu.memory_space<vmem>>, vector<1x128xf32>
    %177 = vector.broadcast %176 : vector<1x128xf32> to vector<8x128xf32>
    %178 = arith.addf %175, %177 : vector<8x128xf32>
    %c0_51 = arith.constant 0 : index
    %c0_52 = arith.constant 0 : index
    %179 = vector.load %arg5[%c0_51, %c0_52] : memref<8x128xf32, #tpu.memory_space<vmem>>, vector<8x128xf32>
    tpu.vector_store %arg5[%c0_51, %c0_52], %178 {strides = array<i32>} : memref<8x128xf32, #tpu.memory_space<vmem>>, vector<8x128xf32>,
    return
  }
  func.func @transform_0(%arg0: i32) -> (i32, i32, i32) {
    %c0_i32 = arith.constant 0 : i32
    %c0_i32_0 = arith.constant 0 : i32
    %c0_i32_1 = arith.constant 0 : i32
    return %c0_i32, %arg0, %c0_i32_0 : i32, i32, i32
  }
  func.func @transform_1(%arg0: i32) -> (i32, i32) {
    %c0_i32 = arith.constant 0 : i32
    %c0_i32_0 = arith.constant 0 : i32
    %c0_i32_1 = arith.constant 0 : i32
    return %c0_i32, %c0_i32_0 : i32, i32
  }
  func.func @transform_2(%arg0: i32) -> (i32, i32) {
    %c0_i32 = arith.constant 0 : i32
    %c0_i32_0 = arith.constant 0 : i32
    %c0_i32_1 = arith.constant 0 : i32
    return %c0_i32, %c0_i32_0 : i32, i32
  }
  func.func @transform_3(%arg0: i32) -> (i32, i32) {
    %c0_i32 = arith.constant 0 : i32
    %c0_i32_0 = arith.constant 0 : i32
    %c0_i32_1 = arith.constant 0 : i32
    return %c0_i32, %c0_i32_0 : i32, i32
  }
  func.func @transform_4(%arg0: i32) -> (i32, i32) {
    %c0_i32 = arith.constant 0 : i32
    %c0_i32_0 = arith.constant 0 : i32
    return %arg0, %c0_i32 : i32, i32
  }
}

</mosaic_0001>

<bundles_post_ra>
// kernel: tpu_custom_call.1
= control target key start
LH: loop header
LB: loop body
LE: loop exit
PB: predicated region body
PF: predicated region fallthrough
CT: control target
= control target key end

     0   :  { %9 = vsyncpa [#allocation3], 0  ;;  %s1144_s0 = inlined_call_operand.hbm [shape: f32[9,8,256], index: 0, kind: input, shape index: {}]   ;;  %s1145_s1 = inlined_call_operand.hbm [shape: f32[64,256], index: 1, kind: input, shape index: {}]   ;;  %s1146_s2 = inlined_call_operand.hbm [shape: f32[32,128], index: 2, kind: input, shape index: {}]   ;;  %s1147_s3 = inlined_call_operand.vmem [shape: f32[1,128], index: 3, kind: input, shape index: {}]   ;;  %s1148_s4 = inlined_call_operand.hbm [shape: f32[8,128], index: 4, kind: output, shape index: {}]  }
   0x1   :  { %10 = vsyncpa [#allocation6], 0 }
   0x2   :  { %11 = vsyncpa [#allocation4], 0  ;;  %s29_s17 = sshll.u32 %s1145_s1, 4  ;;  %s884_s18 = smov [#allocation5]   ;;  %s30_s17 = int_to_ptr.hbm [resolvable:$true] %s29_s17 }
   0x3   :  { %s31_s19 = sshll.u32 %s884_s18, 4  ;;  %s16_s22 = sshll.u32 %s1144_s0, 4  ;;  %s32_s19 = int_to_ptr.vmem [resolvable:$true] %s31_s19  ;;  %s17_s22 = int_to_ptr.hbm [resolvable:$true] %s16_s22 }
   0x4   :  { %s885_s23 = smov 256   ;;  %s886_s24 = smov 16  }
   0x5   :  { %37 = dma.hbm_to_vmem [thread:$0]  %s30_s17, 2048, %s32_s19, [#allocation6], %s885_s23, %s885_s23, %s886_s24  }
   0x6   :  { %s887_s25 = smov [#allocation2]   ;;  %s42_s29 = sshll.u32 %s1146_s2, 4  ;;  %s43_s29 = int_to_ptr.hbm [resolvable:$true] %s42_s29 }
   0x7   :  { %s18_s26 = sshll.u32 %s887_s25, 4  ;;  %s888_s1 = smov [#allocation7]   ;;  %s19_s26 = int_to_ptr.vmem [resolvable:$true] %s18_s26 }
   0x8   :  { %24 = dma.hbm_to_vmem [thread:$0]  %s17_s22, 2304, %s19_s26, [#allocation3], %s885_s23, %s885_s23, %s886_s24  }
   0x9   :  { %s44_s30 = sshll.u32 %s888_s1, 4  ;;  %s889_s5 = smov 128   ;;  %s45_s30 = int_to_ptr.vmem [resolvable:$true] %s44_s30 }
   0xa   :  { %s890_s6 = smov 8  }
   0xb   :  { %50 = dma.hbm_to_vmem [thread:$0]  %s43_s29, 512, %s45_s30, [#allocation6], %s889_s5, %s889_s5, %s890_s6  }
   0xc   :  { %878 = dma.done.wait [#allocation3], 2304  }
   0xd   :  { %879 = vsyncadd [#allocation3], 4294964992 }
   0xe   :  { %880 = dma.done.wait [#allocation6], 2560  }
   0xf   :  { %881 = vsyncadd [#allocation6], 4294964736  ;;  %v929_v0 = vld [vmem:[#allocation5 + $0x70] sm:$0xff]  ;;  %v931_v1 = vld [vmem:[#allocation5 + $0x60] sm:$0xff]  ;;  %v891_v16 = vmov 0.0   ;;  %s892_s0 = smov 64  }
  0x10   :  { %95 = vmatpush.msra.mxu0 %v929_v0  ;;  %v934_v2 = vld [vmem:[#allocation5 + $0x78] sm:$0xff]  ;;  %v936_v3 = vld [vmem:[#allocation5 + $0x68] sm:$0xff]  ;;  %158 = vmatpush.msra.mxu2 %v929_v0  ;;  %v939_v4 = vld [vmem:[#allocation5 + $0x50] sm:$0xff]  ;;  %vm83_vm0 = vcmask 523264   ;;  %s893_s2 = smov 32   ;;  %vm657_vm1 = vcmask 261120  }
  0x11   :  { %115 = vmatpush.msra.mxu1 %v934_v2  ;;  %178 = vmatpush.msra.mxu3 %v934_v2  ;;  %v944_v5 = vld [vmem:[#allocation5 + $0x58] sm:$0xff]  ;;  %v947_v6 = vld [vmem:[#allocation5 + $0x40] sm:$0xff]  ;;  %v952_v7 = vld [vmem:[#allocation5 + $0x48] sm:$0xff]  ;;  %s894_s9 = smov [#allocation8]   ;;  %s688_s13 = sshll.u32 %s1148_s4, 4  ;;  %s689_s13 = int_to_ptr.hbm [resolvable:$true] %s688_s13 }
  0x12   :  { %96 = vmatpush.msra.mxu0 %v931_v1  ;;  %159 = vmatpush.msra.mxu2 %v931_v1  ;;  %v955_v8 = vld [vmem:[#allocation5 + $0x30] sm:$0xff]  ;;  %v960_v9 = vld [vmem:[#allocation5 + $0x38] sm:$0xff]  ;;  %v963_v10 = vld [vmem:[#allocation5 + $0x20] sm:$0xff]  ;;  %s686_s10 = sshll.u32 %s894_s9, 4  ;;  %s687_s10 = int_to_ptr.vmem [resolvable:$true] %s686_s10 }
  0x13   :  { %116 = vmatpush.msra.mxu1 %v936_v3  ;;  %179 = vmatpush.msra.mxu3 %v936_v3  ;;  %v968_v11 = vld [vmem:[#allocation5 + $0x28] sm:$0xff]  ;;  %v971_v12 = vld [vmem:[#allocation5 + $0x10] sm:$0xff]  ;;  %v976_v13 = vld [vmem:[#allocation5 + $0x18] sm:$0xff] }
  0x14   :  { %97 = vmatpush.msra.mxu0 %v939_v4  ;;  %160 = vmatpush.msra.mxu2 %v939_v4  ;;  %v979_v14 = vld [vmem:[#allocation5] sm:$0xff]  ;;  %v984_v15 = vld [vmem:[#allocation5 + $0x8] sm:$0xff]  ;;  %v81_v17 = vld [vmem:[#allocation2] sm:$0xff] }
  0x15   :  { %117 = vmatpush.msra.mxu1 %v944_v5  ;;  %180 = vmatpush.msra.mxu3 %v944_v5  ;;  %v82_v18 = vld [vmem:[#allocation2 + $0x8] sm:$0xff]  ;;  %v143_v36 = vld [vmem:[#allocation2 + $0x10] sm:$0xff]  ;;  %v144_v38 = vld [vmem:[#allocation2 + $0x18] sm:$0xff] }
  0x16   :  { %98 = vmatpush.msra.mxu0 %v947_v6  ;;  %161 = vmatpush.msra.mxu2 %v947_v6  ;;  %v206_v55 = vld [vmem:[#allocation2 + $0x20] sm:$0xff]  ;;  %v207_v57 = vld [vmem:[#allocation2 + $0x28] sm:$0xff] }
  0x17   :  { %118 = vmatpush.msra.mxu1 %v952_v7  ;;  %181 = vmatpush.msra.mxu3 %v952_v7 }
  0x18   :  { %99 = vmatpush.msra.mxu0 %v955_v8  ;;  %162 = vmatpush.msra.mxu2 %v955_v8 }
  0x19   :  { %119 = vmatpush.msra.mxu1 %v960_v9  ;;  %182 = vmatpush.msra.mxu3 %v960_v9 }
  0x1a   :  { %100 = vmatpush.msra.mxu0 %v963_v10  ;;  %163 = vmatpush.msra.mxu2 %v963_v10 }
  0x1b   :  { %120 = vmatpush.msra.mxu1 %v968_v11  ;;  %183 = vmatpush.msra.mxu3 %v968_v11 }
  0x1c   :  { %101 = vmatpush.msra.mxu0 %v971_v12  ;;  %164 = vmatpush.msra.mxu2 %v971_v12 }
  0x1d   :  { %121 = vmatpush.msra.mxu1 %v976_v13  ;;  %184 = vmatpush.msra.mxu3 %v976_v13 }
  0x1e   :  { %102 = vmatpush.msra.mxu0 %v979_v14  ;;  %165 = vmatpush.msra.mxu2 %v979_v14 }
  0x1f   :  { %103 = vmatmul.f32.vlgmr.msra.gmra.mxu0 %v891_v16  ;;  %122 = vmatpush.msra.mxu1 %v984_v15 }
  0x20   :  { %123 = vmatmul.f32.vlgmr.msra.gmra.mxu1 %v891_v16  ;;  %185 = vmatpush.msra.mxu3 %v984_v15 }
  0x21   :  { %221 = vmatpush.msrb.mxu0 %v929_v0  ;;  %241 = vmatpush.msrb.mxu1 %v934_v2 }
  0x22   :  { %284 = vmatpush.msrb.mxu2 %v929_v0  ;;  %304 = vmatpush.msrb.mxu3 %v934_v2 }
  0x23   :  { %222 = vmatpush.msrb.mxu0 %v931_v1  ;;  %242 = vmatpush.msrb.mxu1 %v936_v3 }
  0x24   :  { %285 = vmatpush.msrb.mxu2 %v931_v1  ;;  %305 = vmatpush.msrb.mxu3 %v936_v3 }
  0x25   :  { %223 = vmatpush.msrb.mxu0 %v939_v4  ;;  %243 = vmatpush.msrb.mxu1 %v944_v5 }
  0x26   :  { %286 = vmatpush.msrb.mxu2 %v939_v4  ;;  %306 = vmatpush.msrb.mxu3 %v944_v5 }
  0x27   :  { %224 = vmatpush.msrb.mxu0 %v947_v6  ;;  %244 = vmatpush.msrb.mxu1 %v952_v7 }
  0x28   :  { %287 = vmatpush.msrb.mxu2 %v947_v6  ;;  %307 = vmatpush.msrb.mxu3 %v952_v7 }
  0x29   :  { %225 = vmatpush.msrb.mxu0 %v955_v8  ;;  %245 = vmatpush.msrb.mxu1 %v960_v9 }
  0x2a   :  { %288 = vmatpush.msrb.mxu2 %v955_v8  ;;  %308 = vmatpush.msrb.mxu3 %v960_v9 }
  0x2b   :  { %226 = vmatpush.msrb.mxu0 %v963_v10  ;;  %246 = vmatpush.msrb.mxu1 %v968_v11 }
  0x2c   :  { %289 = vmatpush.msrb.mxu2 %v963_v10  ;;  %309 = vmatpush.msrb.mxu3 %v968_v11 }
  0x2d   :  { %227 = vmatpush.msrb.mxu0 %v971_v12  ;;  %247 = vmatpush.msrb.mxu1 %v976_v13 }
  0x2e   :  { %290 = vmatpush.msrb.mxu2 %v971_v12  ;;  %310 = vmatpush.msrb.mxu3 %v976_v13 }
  0x2f   :  { %228 = vmatpush.msrb.mxu0 %v979_v14  ;;  %248 = vmatpush.msrb.mxu1 %v984_v15 }
  0x30   :  { %291 = vmatpush.msrb.mxu2 %v979_v14  ;;  %311 = vmatpush.msrb.mxu3 %v984_v15 }
  0x31   :  { %347 = vmatpush.msra.mxu0 %v929_v0  ;;  %367 = vmatpush.msra.mxu1 %v934_v2 }
  0x33   :  { %348 = vmatpush.msra.mxu0 %v931_v1  ;;  %368 = vmatpush.msra.mxu1 %v936_v3 }
  0x35   :  { %349 = vmatpush.msra.mxu0 %v939_v4  ;;  %369 = vmatpush.msra.mxu1 %v944_v5 }
  0x37   :  { %350 = vmatpush.msra.mxu0 %v947_v6  ;;  %370 = vmatpush.msra.mxu1 %v952_v7 }
  0x39   :  { %351 = vmatpush.msra.mxu0 %v955_v8  ;;  %371 = vmatpush.msra.mxu1 %v960_v9 }
  0x3b   :  { %352 = vmatpush.msra.mxu0 %v963_v10  ;;  %372 = vmatpush.msra.mxu1 %v968_v11 }
  0x3d   :  { %353 = vmatpush.msra.mxu0 %v971_v12  ;;  %373 = vmatpush.msra.mxu1 %v976_v13 }
  0x3f   :  { %354 = vmatpush.msra.mxu0 %v979_v14  ;;  %374 = vmatpush.msra.mxu1 %v984_v15 }
  0x9c   :  { %v104_v19 = vpop.f32.mrf.mxu0 }
  0x9d   :  { %v105_v20 = vadd.f32 %v104_v19, %v81_v17  ;;  %v124_v21 = vpop.f32.mrf.mxu1 }
  0x9e   :  { %v125_v22 = vadd.f32 %v124_v21, %v82_v18 }
  0x9f   :  { %728 = vtanh.f32 %v105_v20 }
  0xa0   :  { %730 = vtanh.f32 %v125_v22 }
  0xa5   :  { %v729_v23 = vpop.eup %728 }
  0xa6   :  { %v129_v24 = vmul.f32 0.5, %v729_v23  ;;  %v731_v25 = vpop.eup %730 }
  0xa7   :  { %v130_v31 = vmul.f32 0.5, %v731_v25 }
  0xa8   :  { %v131_v26 = vadd.f32 0.5, %v129_v24 }
  0xa9   :  { %v132_v32 = vadd.f32 0.5, %v130_v31 }
  0xaa   :  { %v134_v27 = vmul.f32 %v731_v25, %v131_v26  ;;  %v133_v28 = vmul.f32 0.0, %v131_v26  ;;  %v269_v26 = vld [vmem:[#allocation2 + $0x30] sm:$0xff] }
  0xac   :  { %136 = vrot.lane.b32.xlu0 %v134_v27, %s892_s0 }
 0x11e   :  { %v137_v29 = vpop.permute.xlu0 %136 }
 0x11f   :  { %v139_v30 = vadd.f32 %v137_v29, %v133_v28  ;;  %v270_v28 = vld [vmem:[#allocation2 + $0x38] sm:$0xff] }
 0x121   :  { %732 = vtanh.f32 %v139_v30 }
 0x127   :  { %v733_v33 = vpop.eup %732 }
 0x128   :  { %v141_v34 = vmul.f32 %v733_v33, %v132_v32 }
 0x12a   :  { %146 = vrot.lane.b32.xlu0 %v141_v34, %s892_s0 }
 0x19c   :  { %v147_v35 = vpop.permute.xlu0 %146 }
 0x19d   :  { %699 = vmatmul.msk.f32.vlgmr.msra.gmra.mxu2 %vm83_vm0, %v147_v35  ;;  %700 = vmatmul.msk.f32.vlgmr.msra.gmra.mxu3 %vm83_vm0, %v147_v35 }
 0x19e   :  { %410 = vmatpush.msra.mxu2 %v929_v0  ;;  %430 = vmatpush.msra.mxu3 %v934_v2 }
 0x1a0   :  { %411 = vmatpush.msra.mxu2 %v931_v1  ;;  %431 = vmatpush.msra.mxu3 %v936_v3 }
 0x1a2   :  { %412 = vmatpush.msra.mxu2 %v939_v4  ;;  %432 = vmatpush.msra.mxu3 %v944_v5 }
 0x1a4   :  { %413 = vmatpush.msra.mxu2 %v947_v6  ;;  %433 = vmatpush.msra.mxu3 %v952_v7 }
 0x1a6   :  { %414 = vmatpush.msra.mxu2 %v955_v8  ;;  %434 = vmatpush.msra.mxu3 %v960_v9 }
 0x1a8   :  { %415 = vmatpush.msra.mxu2 %v963_v10  ;;  %435 = vmatpush.msra.mxu3 %v968_v11 }
 0x1aa   :  { %416 = vmatpush.msra.mxu2 %v971_v12  ;;  %436 = vmatpush.msra.mxu3 %v976_v13 }
 0x1ac   :  { %417 = vmatpush.msra.mxu2 %v979_v14  ;;  %437 = vmatpush.msra.mxu3 %v984_v15 }
 0x220   :  { %v167_v37 = vpop.f32.mrf.mxu2  ;;  %v187_v39 = vpop.f32.mrf.mxu3 }
 0x221   :  { %v168_v40 = vadd.f32 %v167_v37, %v143_v36  ;;  %v188_v41 = vadd.f32 %v187_v39, %v144_v38 }
 0x223   :  { %734 = vtanh.f32 %v168_v40 }
 0x224   :  { %736 = vtanh.f32 %v188_v41 }
 0x229   :  { %v735_v42 = vpop.eup %734 }
 0x22a   :  { %v192_v43 = vmul.f32 0.5, %v735_v42  ;;  %v737_v45 = vpop.eup %736 }
 0x22b   :  { %v193_v50 = vmul.f32 0.5, %v737_v45 }
 0x22c   :  { %v194_v44 = vadd.f32 0.5, %v192_v43 }
 0x22d   :  { %v195_v51 = vadd.f32 0.5, %v193_v50  ;;  %v396_v50 = vld [vmem:[#allocation2 + $0x58] sm:$0xff] }
 0x22e   :  { %v197_v46 = vmul.f32 %v737_v45, %v194_v44  ;;  %v196_v47 = vmul.f32 %v194_v44, %v139_v30 }
 0x230   :  { %199 = vrot.lane.b32.xlu1 %v197_v46, %s892_s0 }
 0x2a2   :  { %v200_v48 = vpop.permute.xlu1 %199 }
 0x2a3   :  { %v202_v49 = vadd.f32 %v200_v48, %v196_v47  ;;  %v395_v48 = vld [vmem:[#allocation2 + $0x50] sm:$0xff] }
 0x2a5   :  { %738 = vtanh.f32 %v202_v49 }
 0x2ab   :  { %v739_v52 = vpop.eup %738 }
 0x2ac   :  { %v204_v53 = vmul.f32 %v739_v52, %v195_v51 }
 0x2ae   :  { %209 = vrot.lane.b32.xlu1 %v204_v53, %s892_s0 }
 0x320   :  { %v210_v54 = vpop.permute.xlu1 %209 }
 0x321   :  { %701 = vmatmul.msk.f32.vlgmr.msrb.gmra.mxu0 %vm83_vm0, %v210_v54  ;;  %702 = vmatmul.msk.f32.vlgmr.msrb.gmra.mxu1 %vm83_vm0, %v210_v54 }
 0x322   :  { %473 = vmatpush.msrb.mxu0 %v929_v0  ;;  %493 = vmatpush.msrb.mxu1 %v934_v2 }
 0x324   :  { %474 = vmatpush.msrb.mxu0 %v931_v1  ;;  %494 = vmatpush.msrb.mxu1 %v936_v3 }
 0x326   :  { %475 = vmatpush.msrb.mxu0 %v939_v4  ;;  %495 = vmatpush.msrb.mxu1 %v944_v5 }
 0x328   :  { %476 = vmatpush.msrb.mxu0 %v947_v6  ;;  %496 = vmatpush.msrb.mxu1 %v952_v7 }
 0x32a   :  { %477 = vmatpush.msrb.mxu0 %v955_v8  ;;  %497 = vmatpush.msrb.mxu1 %v960_v9 }
 0x32c   :  { %478 = vmatpush.msrb.mxu0 %v963_v10  ;;  %498 = vmatpush.msrb.mxu1 %v968_v11 }
 0x32e   :  { %479 = vmatpush.msrb.mxu0 %v971_v12  ;;  %499 = vmatpush.msrb.mxu1 %v976_v13 }
 0x330   :  { %480 = vmatpush.msrb.mxu0 %v979_v14  ;;  %500 = vmatpush.msrb.mxu1 %v984_v15 }
 0x39e   :  { %v230_v56 = vpop.f32.mrf.mxu0  ;;  %v250_v58 = vpop.f32.mrf.mxu1 }
 0x39f   :  { %v231_v59 = vadd.f32 %v230_v56, %v206_v55  ;;  %v251_v60 = vadd.f32 %v250_v58, %v207_v57 }
 0x3a1   :  { %740 = vtanh.f32 %v231_v59 }
 0x3a2   :  { %742 = vtanh.f32 %v251_v60 }
 0x3a7   :  { %v741_v61 = vpop.eup %740 }
 0x3a8   :  { %v255_v62 = vmul.f32 0.5, %v741_v61  ;;  %v743_v16 = vpop.eup %742 }
 0x3a9   :  { %v256_v21 = vmul.f32 0.5, %v743_v16 }
 0x3aa   :  { %v257_v63 = vadd.f32 0.5, %v255_v62 }
 0x3ab   :  { %v258_v22 = vadd.f32 0.5, %v256_v21  ;;  %v459_v21 = vld [vmem:[#allocation2 + $0x68] sm:$0xff] }
 0x3ac   :  { %v260_v17 = vmul.f32 %v743_v16, %v257_v63  ;;  %v259_v18 = vmul.f32 %v257_v63, %v202_v49 }
 0x3ae   :  { %262 = vrot.lane.b32.xlu2 %v260_v17, %s892_s0 }
 0x408   :  { %v263_v19 = vpop.permute.xlu2 %262 }
 0x409   :  { %v265_v20 = vadd.f32 %v263_v19, %v259_v18  ;;  %v458_v19 = vld [vmem:[#allocation2 + $0x60] sm:$0xff] }
 0x40b   :  { %744 = vtanh.f32 %v265_v20 }
 0x411   :  { %v745_v23 = vpop.eup %744 }
 0x412   :  { %v267_v24 = vmul.f32 %v745_v23, %v258_v22 }
 0x414   :  { %272 = vrot.lane.b32.xlu2 %v267_v24, %s892_s0 }
 0x46e   :  { %v273_v25 = vpop.permute.xlu2 %272 }
 0x46f   :  { %703 = vmatmul.msk.f32.vlgmr.msrb.gmra.mxu2 %vm83_vm0, %v273_v25  ;;  %704 = vmatmul.msk.f32.vlgmr.msrb.gmra.mxu3 %vm83_vm0, %v273_v25 }
 0x470   :  { %536 = vmatpush.msrb.mxu2 %v929_v0  ;;  %556 = vmatpush.msrb.mxu3 %v934_v2 }
 0x472   :  { %537 = vmatpush.msrb.mxu2 %v931_v1  ;;  %557 = vmatpush.msrb.mxu3 %v936_v3 }
 0x474   :  { %538 = vmatpush.msrb.mxu2 %v939_v4  ;;  %558 = vmatpush.msrb.mxu3 %v944_v5 }
 0x476   :  { %539 = vmatpush.msrb.mxu2 %v947_v6  ;;  %559 = vmatpush.msrb.mxu3 %v952_v7 }
 0x478   :  { %540 = vmatpush.msrb.mxu2 %v955_v8  ;;  %560 = vmatpush.msrb.mxu3 %v960_v9 }
 0x47a   :  { %541 = vmatpush.msrb.mxu2 %v963_v10  ;;  %561 = vmatpush.msrb.mxu3 %v968_v11 }
 0x47c   :  { %542 = vmatpush.msrb.mxu2 %v971_v12  ;;  %562 = vmatpush.msrb.mxu3 %v976_v13 }
 0x47e   :  { %543 = vmatpush.msrb.mxu2 %v979_v14  ;;  %563 = vmatpush.msrb.mxu3 %v984_v15 }
 0x4f2   :  { %v293_v27 = vpop.f32.mrf.mxu2  ;;  %v313_v29 = vpop.f32.mrf.mxu3 }
 0x4f3   :  { %v294_v30 = vadd.f32 %v293_v27, %v269_v26  ;;  %v314_v31 = vadd.f32 %v313_v29, %v270_v28 }
 0x4f5   :  { %746 = vtanh.f32 %v294_v30 }
 0x4f6   :  { %748 = vtanh.f32 %v314_v31 }
 0x4fb   :  { %v747_v32 = vpop.eup %746 }
 0x4fc   :  { %v318_v33 = vmul.f32 0.5, %v747_v32  ;;  %v749_v35 = vpop.eup %748 }
 0x4fd   :  { %v319_v40 = vmul.f32 0.5, %v749_v35 }
 0x4fe   :  { %v320_v34 = vadd.f32 0.5, %v318_v33 }
 0x4ff   :  { %v321_v41 = vadd.f32 0.5, %v319_v40  ;;  %v522_v40 = vld [vmem:[#allocation2 + $0x78] sm:$0xff] }
 0x500   :  { %v323_v36 = vmul.f32 %v749_v35, %v320_v34  ;;  %v322_v37 = vmul.f32 %v320_v34, %v265_v20 }
 0x502   :  { %325 = vrot.lane.b32.xlu0 %v323_v36, %s892_s0 }
 0x574   :  { %v326_v38 = vpop.permute.xlu0 %325 }
 0x575   :  { %v328_v39 = vadd.f32 %v326_v38, %v322_v37  ;;  %v521_v38 = vld [vmem:[#allocation2 + $0x70] sm:$0xff] }
 0x577   :  { %750 = vtanh.f32 %v328_v39 }
 0x57d   :  { %v751_v42 = vpop.eup %750 }
 0x57e   :  { %v330_v43 = vmul.f32 %v751_v42, %v321_v41 }
 0x580   :  { %335 = vrot.lane.b32.xlu1 %v330_v43, %s892_s0 }
 0x5f2   :  { %v336_v44 = vpop.permute.xlu1 %335 }
 0x5f3   :  { %705 = vmatmul.msk.f32.vlgmr.msra.gmra.mxu0 %vm83_vm0, %v336_v44  ;;  %706 = vmatmul.msk.f32.vlgmr.msra.gmra.mxu1 %vm83_vm0, %v336_v44 }
 0x5f4   :  { %599 = vmatpush.msra.mxu0 %v929_v0  ;;  %619 = vmatpush.msra.mxu1 %v934_v2  ;;  %v332_v0 = vld [vmem:[#allocation2 + $0x40] sm:$0xff]  ;;  %v333_v2 = vld [vmem:[#allocation2 + $0x48] sm:$0xff] }
 0x5f6   :  { %600 = vmatpush.msra.mxu0 %v931_v1  ;;  %620 = vmatpush.msra.mxu1 %v936_v3 }
 0x5f8   :  { %601 = vmatpush.msra.mxu0 %v939_v4  ;;  %621 = vmatpush.msra.mxu1 %v944_v5 }
 0x5fa   :  { %602 = vmatpush.msra.mxu0 %v947_v6  ;;  %622 = vmatpush.msra.mxu1 %v952_v7 }
 0x5fc   :  { %603 = vmatpush.msra.mxu0 %v955_v8  ;;  %623 = vmatpush.msra.mxu1 %v960_v9 }
 0x5fe   :  { %604 = vmatpush.msra.mxu0 %v963_v10  ;;  %624 = vmatpush.msra.mxu1 %v968_v11 }
 0x600   :  { %605 = vmatpush.msra.mxu0 %v971_v12  ;;  %625 = vmatpush.msra.mxu1 %v976_v13 }
 0x602   :  { %606 = vmatpush.msra.mxu0 %v979_v14  ;;  %626 = vmatpush.msra.mxu1 %v984_v15 }
 0x670   :  { %v356_v1 = vpop.f32.mrf.mxu0  ;;  %v376_v3 = vpop.f32.mrf.mxu1 }
 0x671   :  { %v357_v4 = vadd.f32 %v356_v1, %v332_v0  ;;  %v377_v5 = vadd.f32 %v376_v3, %v333_v2 }
 0x673   :  { %752 = vtanh.f32 %v357_v4 }
 0x674   :  { %754 = vtanh.f32 %v377_v5 }
 0x679   :  { %v753_v6 = vpop.eup %752 }
 0x67a   :  { %v381_v7 = vmul.f32 0.5, %v753_v6  ;;  %v755_v9 = vpop.eup %754 }
 0x67b   :  { %v382_v14 = vmul.f32 0.5, %v755_v9 }
 0x67c   :  { %v383_v8 = vadd.f32 0.5, %v381_v7 }
 0x67d   :  { %v384_v15 = vadd.f32 0.5, %v382_v14  ;;  %v585_v14 = vld [vmem:[#allocation2 + $0x88] sm:$0xff] }
 0x67e   :  { %v386_v10 = vmul.f32 %v755_v9, %v383_v8  ;;  %v385_v11 = vmul.f32 %v383_v8, %v328_v39 }
 0x680   :  { %388 = vrot.lane.b32.xlu2 %v386_v10, %s892_s0 }
 0x6da   :  { %v389_v12 = vpop.permute.xlu2 %388 }
 0x6db   :  { %v391_v13 = vadd.f32 %v389_v12, %v385_v11  ;;  %v584_v12 = vld [vmem:[#allocation2 + $0x80] sm:$0xff] }
 0x6dd   :  { %756 = vtanh.f32 %v391_v13 }
 0x6e3   :  { %v757_v45 = vpop.eup %756 }
 0x6e4   :  { %v393_v46 = vmul.f32 %v757_v45, %v384_v15 }
 0x6e6   :  { %398 = vrot.lane.b32.xlu0 %v393_v46, %s892_s0 }
 0x758   :  { %v399_v47 = vpop.permute.xlu0 %398 }
 0x759   :  { %707 = vmatmul.msk.f32.vlgmr.msra.gmra.mxu2 %vm83_vm0, %v399_v47  ;;  %708 = vmatmul.msk.f32.vlgmr.msra.gmra.mxu3 %vm83_vm0, %v399_v47 }
 0x7dc   :  { %v419_v49 = vpop.f32.mrf.mxu2  ;;  %v439_v51 = vpop.f32.mrf.mxu3 }
 0x7dd   :  { %v420_v52 = vadd.f32 %v419_v49, %v395_v48  ;;  %v440_v53 = vadd.f32 %v439_v51, %v396_v50 }
 0x7df   :  { %758 = vtanh.f32 %v420_v52  ;;  %v649_v52 = vld [vmem:[#allocation7 + $0x18] sm:$0xff] }
 0x7e0   :  { %760 = vtanh.f32 %v440_v53  ;;  %v648_v53 = vld [vmem:[#allocation7 + $0x10] sm:$0xff]  ;;  %672 = vmatpush.msra.mxu2 %v649_v52 }
 0x7e2   :  { %673 = vmatpush.msra.mxu2 %v648_v53 }
 0x7e5   :  { %v759_v54 = vpop.eup %758 }
 0x7e6   :  { %v444_v55 = vmul.f32 0.5, %v759_v54  ;;  %v761_v57 = vpop.eup %760  ;;  %v647_v54 = vld [vmem:[#allocation7 + $0x8] sm:$0xff] }
 0x7e7   :  { %v445_v62 = vmul.f32 0.5, %v761_v57  ;;  %674 = vmatpush.msra.mxu2 %v647_v54 }
 0x7e8   :  { %v446_v56 = vadd.f32 0.5, %v444_v55  ;;  %v646_v55 = vld [vmem:[#allocation7] sm:$0xff] }
 0x7e9   :  { %v447_v63 = vadd.f32 0.5, %v445_v62  ;;  %675 = vmatpush.msra.mxu2 %v646_v55 }
 0x7ea   :  { %v449_v58 = vmul.f32 %v761_v57, %v446_v56  ;;  %v448_v59 = vmul.f32 %v446_v56, %v391_v13 }
 0x7ec   :  { %451 = vrot.lane.b32.xlu1 %v449_v58, %s892_s0 }
 0x85e   :  { %v452_v60 = vpop.permute.xlu1 %451 }
 0x85f   :  { %v454_v61 = vadd.f32 %v452_v60, %v448_v59 }
 0x861   :  { %762 = vtanh.f32 %v454_v61 }
 0x867   :  { %v763_v16 = vpop.eup %762 }
 0x868   :  { %v456_v17 = vmul.f32 %v763_v16, %v447_v63  ;;  %v727_v16 = vld [vmem:[%s1147_s3] ss:$0 sm:$0xff] }
 0x86a   :  { %461 = vrot.lane.b32.xlu2 %v456_v17, %s892_s0 }
 0x8c4   :  { %v462_v18 = vpop.permute.xlu2 %461 }
 0x8c5   :  { %709 = vmatmul.msk.f32.vlgmr.msrb.gmra.mxu0 %vm83_vm0, %v462_v18  ;;  %710 = vmatmul.msk.f32.vlgmr.msrb.gmra.mxu1 %vm83_vm0, %v462_v18 }
 0x942   :  { %v482_v20 = vpop.f32.mrf.mxu0  ;;  %v502_v22 = vpop.f32.mrf.mxu1 }
 0x943   :  { %v483_v23 = vadd.f32 %v482_v20, %v458_v19  ;;  %v503_v24 = vadd.f32 %v502_v22, %v459_v21 }
 0x945   :  { %764 = vtanh.f32 %v483_v23 }
 0x946   :  { %766 = vtanh.f32 %v503_v24 }
 0x94b   :  { %v765_v25 = vpop.eup %764 }
 0x94c   :  { %v507_v26 = vmul.f32 0.5, %v765_v25  ;;  %v767_v28 = vpop.eup %766 }
 0x94d   :  { %v508_v33 = vmul.f32 0.5, %v767_v28 }
 0x94e   :  { %v509_v27 = vadd.f32 0.5, %v507_v26 }
 0x94f   :  { %v510_v34 = vadd.f32 0.5, %v508_v33 }
 0x950   :  { %v512_v29 = vmul.f32 %v767_v28, %v509_v27  ;;  %v511_v30 = vmul.f32 %v509_v27, %v454_v61 }
 0x952   :  { %514 = vrot.lane.b32.xlu0 %v512_v29, %s892_s0 }
 0x9c4   :  { %v515_v31 = vpop.permute.xlu0 %514 }
 0x9c5   :  { %v517_v32 = vadd.f32 %v515_v31, %v511_v30 }
 0x9c7   :  { %768 = vtanh.f32 %v517_v32 }
 0x9cd   :  { %v769_v35 = vpop.eup %768 }
 0x9ce   :  { %v519_v36 = vmul.f32 %v769_v35, %v510_v34 }
 0x9d0   :  { %524 = vrot.lane.b32.xlu1 %v519_v36, %s892_s0 }
 0xa42   :  { %v525_v37 = vpop.permute.xlu1 %524 }
 0xa43   :  { %711 = vmatmul.msk.f32.vlgmr.msrb.gmra.mxu2 %vm83_vm0, %v525_v37  ;;  %712 = vmatmul.msk.f32.vlgmr.msrb.gmra.mxu3 %vm83_vm0, %v525_v37 }
 0xac6   :  { %v545_v39 = vpop.f32.mrf.mxu2  ;;  %v565_v41 = vpop.f32.mrf.mxu3 }
 0xac7   :  { %v546_v42 = vadd.f32 %v545_v39, %v521_v38  ;;  %v566_v43 = vadd.f32 %v565_v41, %v522_v40 }
 0xac9   :  { %770 = vtanh.f32 %v546_v42 }
 0xaca   :  { %772 = vtanh.f32 %v566_v43 }
 0xacf   :  { %v771_v44 = vpop.eup %770 }
 0xad0   :  { %v570_v0 = vmul.f32 0.5, %v771_v44  ;;  %v773_v2 = vpop.eup %772 }
 0xad1   :  { %v571_v7 = vmul.f32 0.5, %v773_v2 }
 0xad2   :  { %v572_v1 = vadd.f32 0.5, %v570_v0 }
 0xad3   :  { %v573_v8 = vadd.f32 0.5, %v571_v7 }
 0xad4   :  { %v575_v3 = vmul.f32 %v773_v2, %v572_v1  ;;  %v574_v4 = vmul.f32 %v572_v1, %v517_v32 }
 0xad6   :  { %577 = vrot.lane.b32.xlu2 %v575_v3, %s892_s0 }
 0xb30   :  { %v578_v5 = vpop.permute.xlu2 %577 }
 0xb31   :  { %v580_v6 = vadd.f32 %v578_v5, %v574_v4 }
 0xb33   :  { %774 = vtanh.f32 %v580_v6 }
 0xb39   :  { %v775_v9 = vpop.eup %774 }
 0xb3a   :  { %v582_v10 = vmul.f32 %v775_v9, %v573_v8 }
 0xb3c   :  { %587 = vrot.lane.b32.xlu0 %v582_v10, %s892_s0 }
 0xbae   :  { %v588_v11 = vpop.permute.xlu0 %587 }
 0xbaf   :  { %713 = vmatmul.msk.f32.vlgmr.msra.gmra.mxu0 %vm83_vm0, %v588_v11  ;;  %714 = vmatmul.msk.f32.vlgmr.msra.gmra.mxu1 %vm83_vm0, %v588_v11 }
 0xc2c   :  { %v608_v13 = vpop.f32.mrf.mxu0  ;;  %v628_v15 = vpop.f32.mrf.mxu1 }
 0xc2d   :  { %v609_v45 = vadd.f32 %v608_v13, %v584_v12  ;;  %v629_v46 = vadd.f32 %v628_v15, %v585_v14 }
 0xc2f   :  { %776 = vtanh.f32 %v609_v45 }
 0xc30   :  { %778 = vtanh.f32 %v629_v46 }
 0xc35   :  { %v777_v47 = vpop.eup %776 }
 0xc36   :  { %v633_v48 = vmul.f32 0.5, %v777_v47  ;;  %v779_v50 = vpop.eup %778 }
 0xc37   :  { %v634_v59 = vmul.f32 0.5, %v779_v50 }
 0xc38   :  { %v635_v49 = vadd.f32 0.5, %v633_v48 }
 0xc39   :  { %v636_v60 = vadd.f32 0.5, %v634_v59 }
 0xc3a   :  { %v638_v51 = vmul.f32 %v779_v50, %v635_v49  ;;  %v637_v56 = vmul.f32 %v635_v49, %v580_v6 }
 0xc3c   :  { %640 = vrot.lane.b32.xlu1 %v638_v51, %s892_s0 }
 0xcae   :  { %v641_v57 = vpop.permute.xlu1 %640 }
 0xcaf   :  { %v643_v58 = vadd.f32 %v641_v57, %v637_v56 }
 0xcb1   :  { %780 = vtanh.f32 %v643_v58 }
 0xcb7   :  { %v781_v61 = vpop.eup %780 }
 0xcb8   :  { %v645_v62 = vmul.f32 %v781_v61, %v636_v60 }
 0xcba   :  { %655 = vrot.lane.b32.xlu2 %v645_v62, %s893_s2 }
 0xd14   :  { %v656_v63 = vpop.permute.xlu2 %655 }
 0xd15   :  { %715 = vmatmul.msk.f32.vlgmr.msra.gmra.mxu2 %vm657_vm1, %v656_v63 }
 0xd98   :  { %v677_v17 = vpop.f32.mrf.mxu2 }
 0xd99   :  { %v678_v18 = vadd.f32 %v727_v16, %v677_v17 }
 0xd9b   :  { %680 = vst [vmem:[#allocation8] sm:$0xff] %v678_v18 }
 0xd9c   :  { %691 = dma.vmem_to_hbm [thread:$0]  %s687_s10, 128, %s689_s13, [#allocation4]  }
 0xd9d   :  { %882 = dma.done.wait [#allocation4], 128  }
 0xd9e   :  { %883 = vsyncadd [#allocation4], 4294967168 }
 0xd9f   :  { %696 = vsyncpa [#allocation3], 1 }
 0xda0   :  { %697 = vsyncpa [#allocation6], 1 }
 0xda1   :  { %698 = vsyncpa [#allocation4], 1 }

</bundles_post_ra>
